<compile_context>
chip_gen: v6e
topology: v6e:2x2x1
jax: 0.10.0
libtpu: 0.0.40
codegen_flags: <defaults>
</compile_context>

<pallas_src>
import functools
import numpy as np

import jax
import jax.numpy as jnp
from jax.experimental import pallas as pl
from jax.experimental.pallas import tpu as pltpu


# ----------------------------------------------------------------------------
# Device helpers
# ----------------------------------------------------------------------------
def _vmem_capacity_bytes():
    try:
        return int(pltpu.get_tpu_info().vmem_capacity_bytes)
    except Exception:
        return 64 * 1024 * 1024            # conservative (v7x per-TensorCore)


def _clamp_vmem_limit(need_bytes):
    """Scoped-VMEM request, clamped to physical capacity minus headroom."""
    cap = _vmem_capacity_bytes()
    limit = max(int(need_bytes), 32 * 1024 * 1024)
    limit = min(limit, cap - 4 * 1024 * 1024)
    return max(limit, 8 * 1024 * 1024)


# ----------------------------------------------------------------------------
# bf16x3 matmul helper (f32-quality accuracy at bf16 MXU rates)
# ----------------------------------------------------------------------------
def _bf16_split(a):
    hi = a.astype(jnp.bfloat16)
    lo = (a - hi.astype(jnp.float32)).astype(jnp.bfloat16)
    return hi, lo


def _bf16x3_dot_general(a, b, dims):
    a_hi, a_lo = _bf16_split(a)
    b_hi, b_lo = _bf16_split(b)
    out = jax.lax.dot_general(a_hi, b_hi, dims, preferred_element_type=jnp.float32)
    out = out + jax.lax.dot_general(a_lo, b_hi, dims, preferred_element_type=jnp.float32)
    out = out + jax.lax.dot_general(a_hi, b_lo, dims, preferred_element_type=jnp.float32)
    return out


# ----------------------------------------------------------------------------
# Pallas kernels
# ----------------------------------------------------------------------------
def _bjorck_batched_kernel(w_ref, o_ref, *, beta, iters):
    """All (nk, C, C) matrices in one grid step (small C); batched bf16x3."""
    w0 = w_ref[...].astype(jnp.float32)

    def body(_, w):
        # w^T w, contracting the row dim directly (no explicit transpose).
        wtw = _bf16x3_dot_general(w, w, (((1,), (1,)), ((0,), (0,))))
        wwtw = _bf16x3_dot_general(w, wtw, (((2,), (1,)), ((0,), (0,))))
        return (1.0 + beta) * w - beta * wwtw

    o_ref[...] = jax.lax.fori_loop(0, iters, body, w0).astype(o_ref.dtype)


def _bjorck_kernel(w_ref, o_ref, *, beta, iters):
    """One (C, C) matrix per grid step (C >= 128 path)."""
    w0 = w_ref[0].astype(jnp.float32)

    def body(_, w):
        wtw = _bf16x3_dot_general(w, w, (((0,), (0,)), ((), ())))
        wwtw = _bf16x3_dot_general(w, wtw, (((1,), (0,)), ((), ())))
        return (1.0 + beta) * w - beta * wwtw

    o_ref[0] = jax.lax.fori_loop(0, iters, body, w0).astype(o_ref.dtype)


def _conv_kernel(x_ref, w_ref, b_ref, o_ref, *, H, W, k, halo, add_bias):
    """out[b] (Cout, H*W) = sum_taps W_tap (Cout,Cin) @ x_tap (Cin,H*W) [+ bias].

    x_ref holds one image as a flat torus (1, Cin, H*W + 2*halo): position
    halo + j stores x[:, j mod (H*W)].  A circular tap (dh, dw) of the 2-D
    torus is a static lane slice of that buffer; the only subtlety is the
    column wrap (w + dw falling outside [0, W)), which lands one image row off
    in the flat index — fixed by selecting between two slices that differ by
    one row stride W, keyed on each lane's column index.
    """
    p = k // 2
    HW = H * W
    col = jax.lax.broadcasted_iota(jnp.int32, (1, HW), 1) % W   # hoisted once

    def tap(d):                      # value at flat index (j + d) mod HW
        off = halo + d
        return x_ref[0, :, off:off + HW]

    acc = None
    for ki in range(k):
        dh = ki - p
        for kj in range(k):
            dw = kj - p
            d_main = dh * W + dw
            if dw == 0:
                x_tap = tap(d_main)
            elif dw > 0:
                x_tap = jnp.where(col < (W - dw), tap(d_main), tap(d_main - W))
            else:
                x_tap = jnp.where(col >= (-dw), tap(d_main), tap(d_main + W))
            part = jnp.dot(w_ref[ki * k + kj], x_tap,
                           preferred_element_type=jnp.float32)
            acc = part if acc is None else acc + part

    if add_bias:
        acc = acc + b_ref[...]
    o_ref[0] = acc.astype(o_ref.dtype)


# ----------------------------------------------------------------------------
# Pallas wrappers
# ----------------------------------------------------------------------------
def _bjorck_jax_fallback(w, beta, iters):
    def body(_, w):
        wtw = jnp.swapaxes(w, -1, -2) @ w
        return (1.0 + beta) * w - beta * (w @ wtw)
    return jax.lax.fori_loop(0, iters, body, w.astype(jnp.float32)).astype(w.dtype)


def bjorck_iterations_pallas(w, beta, iters):
    nk, m, n = w.shape
    beta = float(beta)
    iters = int(iters)
    cap = _vmem_capacity_bytes()

    if max(m, n) < 128:
        # Tiny matrices: one grid step, all nk matrices batched (per-step grid
        # overhead would dominate).
        kern = functools.partial(_bjorck_batched_kernel, beta=beta, iters=iters)
        return pl.pallas_call(
            kern,
            out_shape=jax.ShapeDtypeStruct((nk, m, n), w.dtype),
            grid=(1,),
            in_specs=[pl.BlockSpec((nk, m, n), lambda i: (0, 0, 0))],
            out_specs=pl.BlockSpec((nk, m, n), lambda i: (0, 0, 0)),
        )(w)

    # C >= 128: one matrix per grid step, independent ("parallel") steps.
    mat_bytes = m * n * 4
    # double-buffered in/out blocks + in-kernel temporaries (w, hi/lo splits,
    # wtw, wwtw) — rough upper bound.
    need = 12 * mat_bytes + (2 << 20)
    if need > int(0.8 * cap):
        # (C, C) working set does not fit this chip's VMEM (e.g. C >= ~1536 on
        # v7x).  TODO(synk): tile the C dim in-kernel instead of falling back.
        return _bjorck_jax_fallback(w, beta, iters)

    kern = functools.partial(_bjorck_kernel, beta=beta, iters=iters)
    return pl.pallas_call(
        kern,
        out_shape=jax.ShapeDtypeStruct((nk, m, n), w.dtype),
        grid=(nk,),
        in_specs=[pl.BlockSpec((1, m, n), lambda i: (i, 0, 0))],
        out_specs=pl.BlockSpec((1, m, n), lambda i: (i, 0, 0)),
        compiler_params=pltpu.CompilerParams(
            dimension_semantics=("parallel",),
            vmem_limit_bytes=_clamp_vmem_limit(need)),
    )(w)


def conv2d_circular_pallas(x, weight, bias, add_bias):
    """Circular (wrap-padded) stride-1 conv; NCHW in, NCHW out (input dtype)."""
    B, Cin, H, W = x.shape
    Cout, _, k, _ = weight.shape
    assert k % 2 == 1, "circular BCOP conv implemented for odd kernel_size"
    p = k // 2
    HW = H * W
    halo = ((p + 1) * W + p) if k > 1 else 0

    # Activations: cast to bf16 BEFORE any duplication; the flat torus halo is
    # a tiny constant-factor duplication (vs k^2 for im2col).  H*W stays the
    # minor (lane-dense) dim end-to-end.
    x_flat = x.reshape(B, Cin, HW).astype(jnp.bfloat16)
    if halo:
        x_flat = jnp.pad(x_flat, ((0, 0), (0, 0), (halo, halo)), mode="wrap")
    Lp = HW + 2 * halo

    # Weight taps (k*k, Cout, Cin): small, resident in VMEM across the grid.
    w_taps = jnp.transpose(weight, (2, 3, 0, 1)).reshape(k * k, Cout, Cin)
    w_taps = w_taps.astype(jnp.bfloat16)
    b2 = bias.reshape(Cout, 1).astype(jnp.float32)

    out_dtype = x.dtype
    out_itemsize = jnp.dtype(out_dtype).itemsize
    need = (2 * Cin * Lp * 2                       # double-buffered x blocks
            + 2 * Cout * HW * out_itemsize         # double-buffered out blocks
            + 2 * (k * k * Cout * Cin * 2 + Cout * 4)
            + Cout * HW * 4                        # f32 accumulator
            + 6 * Cin * HW * 2                     # tap temporaries
            + (2 << 20))

    kern = functools.partial(_conv_kernel, H=H, W=W, k=k, halo=halo,
                             add_bias=bool(add_bias))
    # TODO(synk): on v7x mark this axis CORE_PARALLEL and single-buffer the
    # resident weight block (pl.Buffered(1)); add HW row-tiling with manual
    # halo DMA for very large single images.
    out = pl.pallas_call(
        kern,
        out_shape=jax.ShapeDtypeStruct((B, Cout, HW), out_dtype),
        grid=(B,),
        in_specs=[
            pl.BlockSpec((1, Cin, Lp), lambda b: (b, 0, 0)),        # one image
            pl.BlockSpec((k * k, Cout, Cin), lambda b: (0, 0, 0)),  # weights
            pl.BlockSpec((Cout, 1), lambda b: (0, 0)),              # bias
        ],
        out_specs=pl.BlockSpec((1, Cout, HW), lambda b: (b, 0, 0)),
        compiler_params=pltpu.CompilerParams(
            dimension_semantics=("parallel",),
            vmem_limit_bytes=_clamp_vmem_limit(need)),
    )(x_flat, w_taps, b2)

    return out.reshape(B, Cout, H, W)               # free reshape, no transpose


# ----------------------------------------------------------------------------
# Plain-JAX glue (parameter prep / BCOP weight construction)
# ----------------------------------------------------------------------------
def power_iteration(A, key, n_iters=20):
    shape = A.shape[:-1] + (1,)
    u = jax.random.normal(key, shape, dtype=A.dtype)
    for _ in range(n_iters):
        v = jnp.swapaxes(A, -1, -2) @ u
        v = v / jnp.linalg.norm(v, axis=-2, keepdims=True)
        u = A @ v
        u = u / jnp.linalg.norm(u, axis=-2, keepdims=True)
    s = (jnp.swapaxes(u, -1, -2) @ A @ v)[..., 0, 0]
    return s


def bjorck_orthonormalize(w, key, beta=0.5, iters=30,
                          power_iteration_scaling=True):
    if w.shape[-2] < w.shape[-1]:
        return jnp.swapaxes(
            bjorck_orthonormalize(jnp.swapaxes(w, -1, -2), key, beta, iters,
                                  power_iteration_scaling), -1, -2)
    if power_iteration_scaling:
        s = power_iteration(w, key)
        w = w / s[..., None, None]
    else:
        w = w / (w.shape[0] * w.shape[1]) ** 0.5
    return bjorck_iterations_pallas(w, beta, iters)


def block_orth(p1, p2):
    n = p1.shape[0]
    eye = jnp.eye(n, dtype=p1.dtype)
    return {
        (0, 0): p1 @ p2,
        (0, 1): p1 @ (eye - p2),
        (1, 0): (eye - p1) @ p2,
        (1, 1): (eye - p1) @ (eye - p2),
    }


def matrix_conv(m1, m2):
    n = m1[(0, 0)].shape[0]
    k = int(round(np.sqrt(len(m1))))
    l = int(round(np.sqrt(len(m2))))
    size = k + l - 1
    result = {}
    for i in range(size):
        for j in range(size):
            acc = jnp.zeros((n, n), dtype=m1[(0, 0)].dtype)
            for i1 in range(min(k, i + 1)):
                for i2 in range(min(k, j + 1)):
                    if i - i1 < l and j - i2 < l:
                        acc = acc + m1[(i1, i2)] @ m2[(i - i1, j - i2)]
            result[(i, j)] = acc
    return result


def dict_to_tensor(x, k1, k2):
    return jnp.stack([jnp.stack([x[(i, j)] for j in range(k2)])
                      for i in range(k1)])


def convolution_orthogonal_generator_projs(ksize, cin, cout, ortho, sym_projs):
    flipped = False
    if ksize == 1:
        return ortho.T[:, :, None, None]
    if cin > cout:
        flipped = True
        cin, cout = cout, cin
        ortho = ortho.T
    p = block_orth(sym_projs[0], sym_projs[1])
    for idx in range(1, ksize - 1):
        p = matrix_conv(p, block_orth(sym_projs[idx * 2], sym_projs[idx * 2 + 1]))
    p = {key: ortho @ v for key, v in p.items()}
    t = dict_to_tensor(p, ksize, ksize)
    if flipped:
        return jnp.transpose(t, (2, 3, 1, 0))
    return jnp.transpose(t, (3, 2, 1, 0))


# ----------------------------------------------------------------------------
# Module
# ----------------------------------------------------------------------------
class BCOPConv:
    def __init__(self, in_channels, out_channels, kernel_size=1, stride=1,
                 bias=True, bjorck_beta=0.5, bjorck_iters=30,
                 power_iteration_scaling=True, key=None):
        assert stride in (1, 2)
        self.in_channels = in_channels * stride * stride
        self.out_channels = out_channels
        self.max_channels = max(self.out_channels, self.in_channels)
        self.stride = stride
        self.kernel_size = kernel_size
        self.num_kernels = 2 * kernel_size - 1
        self.bjorck_beta = bjorck_beta
        self.bjorck_iters = bjorck_iters
        self.power_iteration_scaling = power_iteration_scaling
        self.enable_bias = bias

        key = jax.random.PRNGKey(0) if key is None else key
        k_mats, k_bias, self._pi_key = jax.random.split(key, 3)

        # deterministic orthogonal init (QR of gaussian), one per kernel slot
        g = jax.random.normal(
            k_mats, (self.num_kernels, self.max_channels, self.max_channels),
            dtype=jnp.float32)
        q, _ = jnp.linalg.qr(g)
        self.conv_matrices = q

        half = self.max_channels // 2
        self.mask = jnp.concatenate(
            [jnp.ones((self.num_kernels - 1, 1, half), jnp.float32),
             jnp.zeros((self.num_kernels - 1, 1, self.max_channels - half),
                       jnp.float32)], axis=-1)

        stdv = 1.0 / np.sqrt(self.out_channels)
        if bias:
            self.bias = jax.random.uniform(
                k_bias, (self.out_channels,), jnp.float32, -stdv, stdv)
        else:
            self.bias = jnp.zeros((self.out_channels,), jnp.float32)

    def _compute_weight(self):
        ortho = bjorck_orthonormalize(
            self.conv_matrices, self._pi_key, beta=self.bjorck_beta,
            iters=self.bjorck_iters,
            power_iteration_scaling=self.power_iteration_scaling)
        H = ortho[0, :self.in_channels, :self.out_channels]
        PQ = ortho[1:]
        if self.kernel_size > 1:
            PQ = PQ * self.mask
            PQ = PQ @ jnp.swapaxes(PQ, -1, -2)
        return convolution_orthogonal_generator_projs(
            self.kernel_size, self.in_channels, self.out_channels, H, PQ)

    def __call__(self, x):
        if x.ndim == 2:
            x = x[..., None, None]
        weight = self._compute_weight()
        self._weight = weight  # exposed for reference checking

        if self.stride > 1:
            s = self.stride
            B, C, H2, W2 = x.shape
            x = x.reshape(B, C, H2 // s, s, W2 // s, s)
            x = jnp.transpose(x, (0, 1, 3, 5, 2, 4))
            x = x.reshape(B, C * s * s, H2 // s, W2 // s)

        self._x_conv = x          # post-stride, pre-pad (for reference checks)
        bias = self.bias if self.enable_bias else jnp.zeros(
            (self.out_channels,), jnp.float32)
        return conv2d_circular_pallas(x, weight, bias, self.enable_bias)


# ----------------------------------------------------------------------------
# Demo / self-check
# ----------------------------------------------------------------------------
if __name__ == "__main__":
    key = jax.random.PRNGKey(0)
    k_mod, k_x = jax.random.split(key)

    B, Cin, H, W = 2, 8, 16, 16
    Cout, ksize = 8, 3

    mod = BCOPConv(Cin, Cout, kernel_size=ksize, stride=1, bias=True, key=k_mod)
    x = jax.random.normal(k_x, (B, Cin, H, W), dtype=jnp.float32)

    z = mod(x)
    z = jax.block_until_ready(z)
    assert z.shape == (B, Cout, H, W), z.shape
    assert bool(jnp.all(jnp.isfinite(z)))

    # Reference: circular pad + VALID conv with the module's computed weight.
    p = ksize // 2
    x_pad = jnp.pad(mod._x_conv, ((0, 0), (0, 0), (p, p), (p, p)), mode="wrap")

    # Reference 1: same numerics as the kernel (bf16 operands, f32 accumulation).
    z_ref_bf16 = jax.lax.conv_general_dilated(
        x_pad.astype(jnp.bfloat16), mod._weight.astype(jnp.bfloat16),
        (1, 1), "VALID", dimension_numbers=("NCHW", "OIHW", "NCHW"),
        preferred_element_type=jnp.float32)
    z_ref_bf16 = z_ref_bf16 + mod.bias.reshape(1, -1, 1, 1)
    assert bool(jnp.allclose(z, z_ref_bf16, atol=1e-3, rtol=1e-3)), "bf16 ref mismatch"

    # Reference 2: full-f32 conv (loose tolerance bounding bf16 operand error).
    z_ref_f32 = jax.lax.conv_general_dilated(
        x_pad, mod._weight, (1, 1), "VALID",
        dimension_numbers=("NCHW", "OIHW", "NCHW"))
    z_ref_f32 = z_ref_f32 + mod.bias.reshape(1, -1, 1, 1)
    assert bool(jnp.allclose(z, z_ref_f32, atol=5e-2, rtol=5e-2)), "f32 ref mismatch"

    print("KERNEL_OK")
</pallas_src>

<mosaic_0001>
module attributes {stable_mosaic.version = 11 : i64} {
  func.func @_bjorck_batched_kernel(%arg0: i32, %arg1: memref<5x8x8xf32, #tpu.memory_space<vmem>>, %arg2: memref<5x8x8xf32, #tpu.memory_space<vmem>>) attributes {dimension_semantics = [#tpu.dimension_semantics<arbitrary>], iteration_bounds = array<i64: 1>, scalar_prefetch = 0 : i64, scratch_operands = 0 : i64, tpu.core_type = #tpu.core_type<tc>, window_params = [{pipeline_mode = #tpu.pipeline_mode<synchronous>, transform_indices = @transform_0, window_bounds = array<i64: 5, 8, 8>}, {pipeline_mode = #tpu.pipeline_mode<synchronous>, transform_indices = @transform_1, window_bounds = array<i64: 5, 8, 8>}]} {
    %c0 = arith.constant 0 : index
    %c0_0 = arith.constant 0 : index
    %c0_1 = arith.constant 0 : index
    %0 = vector.load %arg1[%c0, %c0_0, %c0_1] : memref<5x8x8xf32, #tpu.memory_space<vmem>>, vector<5x8x8xf32>
    %c0_i32 = arith.constant 0 : i32
    %c30_i32 = arith.constant 30 : i32
    %1 = arith.addi %c0_i32, %c30_i32 : i32
    %c1_i32 = arith.constant 1 : i32
    %2 = scf.for %arg3 = %c0_i32 to %1 step %c1_i32 iter_args(%arg4 = %0) -> (vector<5x8x8xf32>)  : i32 {
      %4 = arith.truncf %arg4 : vector<5x8x8xf32> to vector<5x8x8xbf16>
      %5 = arith.extf %4 : vector<5x8x8xbf16> to vector<5x8x8xf32>
      %6 = arith.subf %arg4, %5 : vector<5x8x8xf32>
      %7 = arith.truncf %6 : vector<5x8x8xf32> to vector<5x8x8xbf16>
      %8 = arith.truncf %arg4 : vector<5x8x8xf32> to vector<5x8x8xbf16>
      %9 = arith.extf %8 : vector<5x8x8xbf16> to vector<5x8x8xf32>
      %10 = arith.subf %arg4, %9 : vector<5x8x8xf32>
      %11 = arith.truncf %10 : vector<5x8x8xf32> to vector<5x8x8xbf16>
      %cst = arith.constant dense<0.000000e+00> : vector<5x8x8xf32>
      %12 = tpu.matmul %4, %8, %cst {dimension_numbers = #tpu.dot_dimension_numbers<[1], [1], [2], [2], [0, 0, 0, 2, 1, 2], [0], [0]>} : vector<5x8x8xbf16>, vector<5x8x8xbf16>, vector<5x8x8xf32> -> vector<5x8x8xf32>
      %cst_5 = arith.constant dense<0.000000e+00> : vector<5x8x8xf32>
      %13 = tpu.matmul %7, %8, %cst_5 {dimension_numbers = #tpu.dot_dimension_numbers<[1], [1], [2], [2], [0, 0, 0, 2, 1, 2], [0], [0]>} : vector<5x8x8xbf16>, vector<5x8x8xbf16>, vector<5x8x8xf32> -> vector<5x8x8xf32>
      %14 = arith.addf %12, %13 : vector<5x8x8xf32>
      %cst_6 = arith.constant dense<0.000000e+00> : vector<5x8x8xf32>
      %15 = tpu.matmul %4, %11, %cst_6 {dimension_numbers = #tpu.dot_dimension_numbers<[1], [1], [2], [2], [0, 0, 0, 2, 1, 2], [0], [0]>} : vector<5x8x8xbf16>, vector<5x8x8xbf16>, vector<5x8x8xf32> -> vector<5x8x8xf32>
      %16 = arith.addf %14, %15 : vector<5x8x8xf32>
      %17 = arith.truncf %arg4 : vector<5x8x8xf32> to vector<5x8x8xbf16>
      %18 = arith.extf %17 : vector<5x8x8xbf16> to vector<5x8x8xf32>
      %19 = arith.subf %arg4, %18 : vector<5x8x8xf32>
      %20 = arith.truncf %19 : vector<5x8x8xf32> to vector<5x8x8xbf16>
      %21 = arith.truncf %16 : vector<5x8x8xf32> to vector<5x8x8xbf16>
      %22 = arith.extf %21 : vector<5x8x8xbf16> to vector<5x8x8xf32>
      %23 = arith.subf %16, %22 : vector<5x8x8xf32>
      %24 = arith.truncf %23 : vector<5x8x8xf32> to vector<5x8x8xbf16>
      %cst_7 = arith.constant dense<0.000000e+00> : vector<5x8x8xf32>
      %25 = tpu.matmul %17, %21, %cst_7 {dimension_numbers = #tpu.dot_dimension_numbers<[2], [1], [1], [2], [0, 0, 0, 1, 1, 2], [0], [0]>} : vector<5x8x8xbf16>, vector<5x8x8xbf16>, vector<5x8x8xf32> -> vector<5x8x8xf32>
      %cst_8 = arith.constant dense<0.000000e+00> : vector<5x8x8xf32>
      %26 = tpu.matmul %20, %21, %cst_8 {dimension_numbers = #tpu.dot_dimension_numbers<[2], [1], [1], [2], [0, 0, 0, 1, 1, 2], [0], [0]>} : vector<5x8x8xbf16>, vector<5x8x8xbf16>, vector<5x8x8xf32> -> vector<5x8x8xf32>
      %27 = arith.addf %25, %26 : vector<5x8x8xf32>
      %cst_9 = arith.constant dense<0.000000e+00> : vector<5x8x8xf32>
      %28 = tpu.matmul %17, %24, %cst_9 {dimension_numbers = #tpu.dot_dimension_numbers<[2], [1], [1], [2], [0, 0, 0, 1, 1, 2], [0], [0]>} : vector<5x8x8xbf16>, vector<5x8x8xbf16>, vector<5x8x8xf32> -> vector<5x8x8xf32>
      %29 = arith.addf %27, %28 : vector<5x8x8xf32>
      %cst_10 = arith.constant 1.500000e+00 : f32
      %30 = vector.broadcast %cst_10 : f32 to vector<5x8x8xf32>
      %31 = arith.mulf %30, %arg4 : vector<5x8x8xf32>
      %cst_11 = arith.constant 5.000000e-01 : f32
      %32 = vector.broadcast %cst_11 : f32 to vector<5x8x8xf32>
      %33 = arith.mulf %32, %29 : vector<5x8x8xf32>
      %34 = arith.subf %31, %33 : vector<5x8x8xf32>
      scf.yield %34 : vector<5x8x8xf32>
    }
    %c0_2 = arith.constant 0 : index
    %c0_3 = arith.constant 0 : index
    %c0_4 = arith.constant 0 : index
    %3 = vector.load %arg2[%c0_2, %c0_3, %c0_4] : memref<5x8x8xf32, #tpu.memory_space<vmem>>, vector<5x8x8xf32>
    tpu.vector_store %arg2[%c0_2, %c0_3, %c0_4], %2 {strides = array<i32>} : memref<5x8x8xf32, #tpu.memory_space<vmem>>, vector<5x8x8xf32>,
    return
  }
  func.func @transform_0(%arg0: i32) -> (i32, i32, i32) {
    %c0_i32 = arith.constant 0 : i32
    %c0_i32_0 = arith.constant 0 : i32
    %c0_i32_1 = arith.constant 0 : i32
    %c0_i32_2 = arith.constant 0 : i32
    return %c0_i32, %c0_i32_0, %c0_i32_1 : i32, i32, i32
  }
  func.func @transform_1(%arg0: i32) -> (i32, i32, i32) {
    %c0_i32 = arith.constant 0 : i32
    %c0_i32_0 = arith.constant 0 : i32
    %c0_i32_1 = arith.constant 0 : i32
    %c0_i32_2 = arith.constant 0 : i32
    return %c0_i32, %c0_i32_0, %c0_i32_1 : i32, i32, i32
  }
}

</mosaic_0001>

<bundles_post_ra>
// kernel: tpu_custom_call.1
= control target key start
LH: loop header
LB: loop body
LE: loop exit
PB: predicated region body
PF: predicated region fallthrough
CT: control target
= control target key end

     0   :  { %6 = vsyncpa [#allocation3], 0  ;;  %s2356_s0 = inlined_call_operand.hbm [shape: f32[5,8,8], index: 0, kind: input, shape index: {}]   ;;  %s2357_s1 = inlined_call_operand.hbm [shape: f32[5,8,8], index: 1, kind: output, shape index: {}]  }
   0x1   :  { %7 = vsyncpa [#allocation4], 0  ;;  %s2037_s6 = smov [#allocation2]  }
   0x2   :  { %s13_s7 = sshll.u32 %s2037_s6, 4  ;;  %s14_s7 = int_to_ptr.vmem [resolvable:$true] %s13_s7 }
   0x3   :  { %s1953_s8 = scalar_lea.vmem %s14_s7, 640  ;;  %p1958_p1 = scmp.lt.s32.totalorder %s14_s7, %s14_s7 }
   0x4   :  { %p1954_p0 = scmp.ne.s32.totalorder %s14_s7, %s1953_s8  ;;  %p1959_p2 = scmp.lt.s32.totalorder %s1953_s8, %s1953_s8 }
   0x6   :  { %p1960_p3 = por %p1959_p2, %p1958_p1 }
   0x8   :  { %p1961_p4 = pnand %p1960_p3, %p1954_p0 }
   0xa   :  { %1964 = shalt.err (!%p1961_p4)
}
   0xb   :  { %s2038_s9 = smov 128   ;;  %s2039_s10 = smov 8  }
   0xc   :  { %19 = dma.hbm_to_vmem [thread:$0]  %s2356_s0, 640, %s14_s7, [#allocation3], %s2038_s9, %s2038_s9, %s2039_s10  }
   0xd   :  { %2009 = dma.done.wait [#allocation3], 640  }
   0xe   :  { %2010 = vsyncadd [#allocation3], 4294966656  ;;  %v24_v0 = vld [vmem:[#allocation2] sm:$0xff]   ;;  %v25_v1 = vld [vmem:[#allocation2 + $0x8] sm:$0xff]   ;;  %s2069_s13 = smov 0  }
   0xf   :  { %v26_v2 = vld [vmem:[#allocation2 + $0x10] sm:$0xff]   ;;  %v27_v3 = vld [vmem:[#allocation2 + $0x18] sm:$0xff]   ;;  %v28_v4 = vld [vmem:[#allocation2 + $0x20] sm:$0xff]  }
  0x10 LB: > { %v2091_v5 = vpack.c.bf16 %v2031_v0, %v2031_v0  ;;  %v2095_v6 = vpack.c.bf16 %v2027_v1, %v2027_v1  ;;  %v2099_v7 = vpack.c.bf16 %v2023_v2, %v2023_v2  ;;  %v2103_v8 = vpack.c.bf16 %v2019_v3, %v2019_v3  ;;  %s34_s13 = sadd.s32 1, %s2035_s13   ;;  %s2035_s13 = sphi %s2069_s13, %s34_s13   ;;  %v2031_v0 = vphi %v24_v0, %v2362_v0   ;;  %v2027_v1 = vphi %v25_v1, %v2361_v1   ;;  %v2023_v2 = vphi %v26_v2, %v2360_v2   ;;  %v2019_v3 = vphi %v27_v3, %v2359_v3   ;;  %v2015_v4 = vphi %v28_v4, %v2358_v4  }
  0x11   : > { %vm80_vm0 = vcmask 1043456   ;;  %v2040_v13 = vmov 0.0   ;;  %v2119_v19 = vpack.c.bf16 %v2015_v4, %v2015_v4  ;;  %vm2041_vm1 = vmmov 0   ;;  %p31_p5 = scmp.ge.s32.totalorder %s34_s13, 30  }
  0x12   : > { %v45_v9 = vunpack.c.l.bf16 %v2091_v5  ;;  %v46_v10 = vunpack.c.l.bf16 %v2095_v6  ;;  %v47_v11 = vunpack.c.l.bf16 %v2099_v7  ;;  %v48_v12 = vunpack.c.l.bf16 %v2103_v8  ;;  %1710 = vmatprep.subr.bf16.mxu0 %v2040_v13  ;;  %1716 = vmatprep.subr.bf16.mxu1 %v2040_v13  ;;  %s2042_s0 = smov (%p31_p5), [#allocation5]  }
  0x13   : > { %v82_v14 = vsel %vm80_vm0, %v2091_v5, 0  ;;  %1712 = vmatprep.mubr.msk.bf16.mxu0 %vm2041_vm1, %v2040_v13  ;;  %v144_v20 = vsel %vm80_vm0, %v2095_v6, 0  ;;  %1718 = vmatprep.mubr.msk.bf16.mxu1 %vm2041_vm1, %v2040_v13  ;;  %v49_v23 = vunpack.c.l.bf16 %v2119_v19  ;;  %vm76_vm2 = vcmask 64512   ;;  %s1588_s14 = sshll.u32 (%p31_p5), %s2042_s0, 4  ;;  %s1589_s14 = int_to_ptr.vmem [resolvable:$true] %s1588_s14 }
  0x14   : > { %v50_v15 = vsub.f32 %v2031_v0, %v45_v9  ;;  %v51_v16 = vsub.f32 %v2027_v1, %v46_v10  ;;  %v52_v17 = vsub.f32 %v2023_v2, %v47_v11  ;;  %v53_v18 = vsub.f32 %v2019_v3, %v48_v12  ;;  %1711 = vmatpush3.bf16.msra.mxu0 %v82_v14  ;;  %s1965_s15 = scalar_lea.vmem (%p31_p5), %s1589_s14, 640  ;;  %p1970_p7 = scmp.lt.s32.totalorder (%p31_p5), %s1589_s14, %s1589_s14 }
  0x15   : > { %1717 = vmatpush3.bf16.msra.mxu1 %v144_v20  ;;  %1722 = vmatprep.subr.bf16.mxu0 %v2040_v13  ;;  %v54_v26 = vsub.f32 %v2015_v4, %v49_v23  ;;  %v206_v28 = vsel %vm80_vm0, %v2099_v7, 0  ;;  %v268_v30 = vsel %vm80_vm0, %v2103_v8, 0  ;;  %v330_v33 = vsel %vm80_vm0, %v2119_v19, 0  ;;  %p1966_p6 = scmp.ne.s32.totalorder (%p31_p5), %s1589_s14, %s1965_s15  ;;  %p1971_p8 = scmp.lt.s32.totalorder (%p31_p5), %s1965_s15, %s1965_s15 }
  0x16   : > { %v2127_v21 = vpack.c.bf16 %v50_v15, %v50_v15  ;;  %v2129_v22 = vpack.c.bf16 %v52_v17, %v52_v17  ;;  %1728 = vmatprep.subr.bf16.mxu1 %v2040_v13  ;;  %v2135_v24 = vpack.c.bf16 %v51_v16, %v51_v16  ;;  %v2138_v25 = vpack.c.bf16 %v53_v18, %v53_v18 }
  0x17   : > { %v2143_v27 = vpack.c.bf16 %v54_v26, %v54_v26  ;;  %p1972_p9 = por (%p31_p5), %p1971_p8, %p1970_p7 }
  0x18   : > { %60 = vxpose.xlu0.c.b16.start.end [1/1] (short) (narrow) %v2127_v21, 16  ;;  %186 = vxpose.xlu1.c.b16.start.end [1/1] (short) (narrow) %v2129_v22, 16  ;;  %v668_v40 = vsel %vm80_vm0, %v2127_v21, 0  ;;  %v711_v42 = vsel %vm80_vm0, %v2135_v24, 0  ;;  %v754_v43 = vsel %vm80_vm0, %v2129_v22, 0  ;;  %v797_v44 = vsel %vm80_vm0, %v2138_v25, 0 }
  0x19   : > { %v840_v45 = vsel %vm80_vm0, %v2143_v27, 0  ;;  %p1973_p10 = pnand (%p31_p5), %p1972_p9, %p1966_p6 }
  0x1c   : > { %124 = vxpose.xlu0.c.b16.start.end [1/1] (short) (narrow) %v2135_v24, 16  ;;  %248 = vxpose.xlu1.c.b16.start.end [1/1] (short) (narrow) %v2138_v25, 16 }
  0x20   : > { %310 = vxpose.xlu0.c.b16.start.end [1/1] (short) (narrow) %v2143_v27, 16  ;;  %372 = vxpose.xlu1.c.b16.start.end [1/1] (short) (narrow) %v2091_v5, 16 }
  0x24   : > { %431 = vxpose.xlu0.c.b16.start.end [1/1] (short) (narrow) %v2095_v6, 16  ;;  %490 = vxpose.xlu1.c.b16.start.end [1/1] (short) (narrow) %v2099_v7, 16 }
  0x28   : > { %549 = vxpose.xlu0.c.b16.start.end [1/1] (short) (narrow) %v2103_v8, 16  ;;  %608 = vxpose.xlu1.c.b16.start.end [1/1] (short) (narrow) %v2119_v19, 16 }
  0x7a   : > { %v68_v29 = vpop.trf.xlu0  ;;  %v194_v32 = vpop.trf.xlu1 }
  0x7b   : > { %1713 = vmatmul.mubr.msk.bf16.vlgmr.msra.gmra.mxu0 %vm76_vm2, %v68_v29 }
  0x7c   : > { %1723 = vmatpush3.bf16.msra.mxu0 %v206_v28  ;;  %1724 = vmatprep.mubr.msk.bf16.mxu0 %vm2041_vm1, %v2040_v13 }
  0x7d   : > { %1734 = vmatprep.subr.bf16.mxu0 %v2040_v13 }
  0x7e   : > { %v132_v31 = vpop.trf.xlu0  ;;  %v256_v34 = vpop.trf.xlu1 }
  0x7f   : > { %1719 = vmatmul.mubr.msk.bf16.vlgmr.msra.gmra.mxu1 %vm76_vm2, %v132_v31 }
  0x80   : > { %1729 = vmatpush3.bf16.msra.mxu1 %v268_v30  ;;  %1730 = vmatprep.mubr.msk.bf16.mxu1 %vm2041_vm1, %v2040_v13 }
  0x81   : > { %1740 = vmatprep.subr.bf16.mxu1 %v2040_v13 }
  0x82   : > { %v318_v35 = vpop.trf.xlu0  ;;  %v380_v36 = vpop.trf.xlu1 }
  0x83   : > { %1725 = vmatmul.mubr.msk.bf16.vlgmr.msra.gmra.mxu0 %vm76_vm2, %v194_v32 }
  0x84   : > { %1735 = vmatpush3.bf16.msra.mxu0 %v330_v33  ;;  %1736 = vmatprep.mubr.msk.bf16.mxu0 %vm2041_vm1, %v2040_v13 }
  0x85   : > { %1746 = vmatprep.subr.bf16.mxu0 %v2040_v13 }
  0x86   : > { %v439_v37 = vpop.trf.xlu0  ;;  %v498_v38 = vpop.trf.xlu1 }
  0x87   : > { %1731 = vmatmul.mubr.msk.bf16.vlgmr.msra.gmra.mxu1 %vm76_vm2, %v256_v34 }
  0x88   : > { %1741 = vmatpush3.bf16.msra.mxu1 %v82_v14  ;;  %1742 = vmatprep.mubr.msk.bf16.mxu1 %vm2041_vm1, %v2040_v13 }
  0x89   : > { %1752 = vmatprep.subr.bf16.mxu1 %v2040_v13 }
  0x8a   : > { %v557_v39 = vpop.trf.xlu0  ;;  %v616_v41 = vpop.trf.xlu1 }
  0x8b   : > { %1737 = vmatmul.mubr.msk.bf16.vlgmr.msra.gmra.mxu0 %vm76_vm2, %v318_v35 }
  0x8c   : > { %1747 = vmatpush3.bf16.msra.mxu0 %v144_v20  ;;  %1748 = vmatprep.mubr.msk.bf16.mxu0 %vm2041_vm1, %v2040_v13 }
  0x8d   : > { %1758 = vmatprep.subr.bf16.mxu0 %v2040_v13 }
  0x8f   : > { %1743 = vmatmul.mubr.msk.bf16.vlgmr.msra.gmra.mxu1 %vm76_vm2, %v380_v36 }
  0x90   : > { %1753 = vmatpush3.bf16.msra.mxu1 %v206_v28  ;;  %1754 = vmatprep.mubr.msk.bf16.mxu1 %vm2041_vm1, %v2040_v13 }
  0x91   : > { %1764 = vmatprep.subr.bf16.mxu1 %v2040_v13 }
  0x93   : > { %1749 = vmatmul.mubr.msk.bf16.vlgmr.msra.gmra.mxu0 %vm76_vm2, %v439_v37 }
  0x94   : > { %1759 = vmatpush3.bf16.msra.mxu0 %v268_v30  ;;  %1760 = vmatprep.mubr.msk.bf16.mxu0 %vm2041_vm1, %v2040_v13 }
  0x95   : > { %1770 = vmatprep.subr.bf16.mxu0 %v2040_v13 }
  0x97   : > { %1755 = vmatmul.mubr.msk.bf16.vlgmr.msra.gmra.mxu1 %vm76_vm2, %v498_v38 }
  0x98   : > { %1765 = vmatpush3.bf16.msra.mxu1 %v330_v33  ;;  %1766 = vmatprep.mubr.msk.bf16.mxu1 %vm2041_vm1, %v2040_v13 }
  0x99   : > { %1776 = vmatprep.subr.bf16.mxu1 %v2040_v13 }
  0x9b   : > { %1761 = vmatmul.mubr.msk.bf16.vlgmr.msra.gmra.mxu0 %vm76_vm2, %v557_v39 }
  0x9c   : > { %1771 = vmatpush3.bf16.msra.mxu0 %v668_v40  ;;  %1772 = vmatprep.mubr.msk.bf16.mxu0 %vm2041_vm1, %v2040_v13 }
  0x9d   : > { %1782 = vmatprep.subr.bf16.mxu0 %v2040_v13 }
  0x9f   : > { %1767 = vmatmul.mubr.msk.bf16.vlgmr.msra.gmra.mxu1 %vm76_vm2, %v616_v41 }
  0xa0   : > { %1777 = vmatpush3.bf16.msra.mxu1 %v711_v42  ;;  %1778 = vmatprep.mubr.msk.bf16.mxu1 %vm2041_vm1, %v2040_v13 }
  0xa1   : > { %1788 = vmatprep.subr.bf16.mxu1 %v2040_v13 }
  0xa3   : > { %1773 = vmatmul.mubr.msk.bf16.vlgmr.msra.gmra.mxu0 %vm76_vm2, %v380_v36 }
  0xa4   : > { %1783 = vmatpush3.bf16.msra.mxu0 %v754_v43  ;;  %1784 = vmatprep.mubr.msk.bf16.mxu0 %vm2041_vm1, %v2040_v13 }
  0xa5   : > { %1794 = vmatprep.subr.bf16.mxu0 %v2040_v13 }
  0xa7   : > { %1779 = vmatmul.mubr.msk.bf16.vlgmr.msra.gmra.mxu1 %vm76_vm2, %v439_v37 }
  0xa8   : > { %1789 = vmatpush3.bf16.msra.mxu1 %v797_v44  ;;  %1790 = vmatprep.mubr.msk.bf16.mxu1 %vm2041_vm1, %v2040_v13 }
  0xa9   : > { %1800 = vmatprep.subr.bf16.mxu1 %v2040_v13 }
  0xab   : > { %1785 = vmatmul.mubr.msk.bf16.vlgmr.msra.gmra.mxu0 %vm76_vm2, %v498_v38 }
  0xac   : > { %1795 = vmatpush3.bf16.msra.mxu0 %v840_v45  ;;  %1796 = vmatprep.mubr.msk.bf16.mxu0 %vm2041_vm1, %v2040_v13 }
  0xad   : > { %1806 = vmatprep.subr.bf16.mxu0 %v2040_v13 }
  0xaf   : > { %1791 = vmatmul.mubr.msk.bf16.vlgmr.msra.gmra.mxu1 %vm76_vm2, %v557_v39 }
  0xb0   : > { %1802 = vmatprep.mubr.msk.bf16.mxu1 %vm2041_vm1, %v2040_v13 }
  0xb3   : > { %1797 = vmatmul.mubr.msk.bf16.vlgmr.msra.gmra.mxu0 %vm76_vm2, %v616_v41 }
  0xb4   : > { %1808 = vmatprep.mubr.msk.bf16.mxu0 %vm2041_vm1, %v2040_v13 }
 0x13b   : > { %v118_v46 = vpop.f32.mrf.mxu0 }
 0x13d   : > { %v1714_v47 = vpop.f32.mrf.mxu0 }
 0x13f   : > { %v121_v48 = vpop.f32.mrf.mxu0  ;;  %v180_v49 = vpop.f32.mrf.mxu1 }
 0x141   : > { %v1715_v50 = vpop.f32.mrf.mxu0  ;;  %v1720_v51 = vpop.f32.mrf.mxu1 }
 0x143   : > { %v183_v52 = vpop.f32.mrf.mxu1  ;;  %v242_v53 = vpop.f32.mrf.mxu0 }
 0x145   : > { %v1721_v54 = vpop.f32.mrf.mxu1  ;;  %v1726_v55 = vpop.f32.mrf.mxu0 }
 0x147   : > { %v245_v56 = vpop.f32.mrf.mxu0  ;;  %v304_v57 = vpop.f32.mrf.mxu1 }
 0x149   : > { %v1727_v58 = vpop.f32.mrf.mxu0  ;;  %v1732_v59 = vpop.f32.mrf.mxu1 }
 0x14b   : > { %v307_v60 = vpop.f32.mrf.mxu1  ;;  %v366_v61 = vpop.f32.mrf.mxu0 }
 0x14d   : > { %v1733_v62 = vpop.f32.mrf.mxu1  ;;  %v1738_v63 = vpop.f32.mrf.mxu0 }
 0x14f   : > { %v369_v9 = vpop.f32.mrf.mxu0  ;;  %v425_v10 = vpop.f32.mrf.mxu1 }
 0x150   : > { %v426_v36 = vadd.f32 %v425_v10, %v118_v46 }
 0x151   : > { %v1739_v11 = vpop.f32.mrf.mxu0  ;;  %v1744_v12 = vpop.f32.mrf.mxu1 }
 0x153   : > { %v428_v14 = vpop.f32.mrf.mxu1  ;;  %v484_v15 = vpop.f32.mrf.mxu0 }
 0x154   : > { %v485_v42 = vadd.f32 %v484_v15, %v180_v49 }
 0x155   : > { %v1745_v16 = vpop.f32.mrf.mxu1  ;;  %v1750_v17 = vpop.f32.mrf.mxu0 }
 0x157   : > { %v487_v18 = vpop.f32.mrf.mxu0  ;;  %v543_v20 = vpop.f32.mrf.mxu1 }
 0x158   : > { %v544_v51 = vadd.f32 %v543_v20, %v242_v53 }
 0x159   : > { %v1751_v23 = vpop.f32.mrf.mxu0  ;;  %v1756_v26 = vpop.f32.mrf.mxu1 }
 0x15b   : > { %v546_v28 = vpop.f32.mrf.mxu1  ;;  %v602_v29 = vpop.f32.mrf.mxu0 }
 0x15c   : > { %v603_v53 = vadd.f32 %v602_v29, %v304_v57 }
 0x15d   : > { %v1757_v30 = vpop.f32.mrf.mxu1  ;;  %v1762_v31 = vpop.f32.mrf.mxu0 }
 0x15f   : > { %v605_v32 = vpop.f32.mrf.mxu0  ;;  %v661_v33 = vpop.f32.mrf.mxu1 }
 0x160   : > { %v662_v57 = vadd.f32 %v661_v33, %v366_v61 }
 0x161   : > { %v1763_v34 = vpop.f32.mrf.mxu0  ;;  %v1768_v35 = vpop.f32.mrf.mxu1 }
 0x163   : > { %v664_v37 = vpop.f32.mrf.mxu1  ;;  %v704_v38 = vpop.f32.mrf.mxu0 }
 0x164   : > { %v2225_v39 = vadd.f32 %v704_v38, %v426_v36 }
 0x165   : > { %v1769_v40 = vpop.f32.mrf.mxu1  ;;  %v1774_v41 = vpop.f32.mrf.mxu0 }
 0x166   : > { %v2229_v43 = vpack.c.bf16 %v2225_v39, %v2225_v39 }
 0x167   : > { %v707_v44 = vpop.f32.mrf.mxu0  ;;  %v747_v45 = vpop.f32.mrf.mxu1 }
 0x168   : > { %v2231_v47 = vadd.f32 %v747_v45, %v485_v42  ;;  %v910_v48 = vsel %vm80_vm0, %v2229_v43, 0 }
 0x169   : > { %v1775_v50 = vpop.f32.mrf.mxu0  ;;  %v1780_v46 = vpop.f32.mrf.mxu1  ;;  %1801 = vmatpush3.bf16.msra.mxu1 %v910_v48 }
 0x16a   : > { %v2237_v52 = vpack.c.bf16 %v2231_v47, %v2231_v47  ;;  %1812 = vmatprep.subr.bf16.mxu1 %v2040_v13 }
 0x16b   : > { %v750_v49 = vpop.f32.mrf.mxu1  ;;  %v790_v54 = vpop.f32.mrf.mxu0 }
 0x16c   : > { %v2240_v55 = vadd.f32 %v790_v54, %v544_v51  ;;  %1803 = vmatmul.mubr.msk.bf16.vlgmr.msra.gmra.mxu1 %vm76_vm2, %v2127_v21  ;;  %v955_v56 = vsel %vm80_vm0, %v2237_v52, 0 }
 0x16d   : > { %v1781_v58 = vpop.f32.mrf.mxu1  ;;  %v1786_v59 = vpop.f32.mrf.mxu0  ;;  %1807 = vmatpush3.bf16.msra.mxu0 %v955_v56  ;;  %1814 = vmatprep.mubr.msk.bf16.mxu1 %vm2041_vm1, %v2040_v13 }
 0x16e   : > { %v889_v60 = vpack.c.bf16 %v2240_v55, %v2240_v55  ;;  %1818 = vmatprep.subr.bf16.mxu0 %v2040_v13 }
 0x16f   : > { %v793_v62 = vpop.f32.mrf.mxu0  ;;  %v833_v63 = vpop.f32.mrf.mxu1 }
 0x170   : > { %v885_v9 = vadd.f32 %v833_v63, %v603_v53  ;;  %1809 = vmatmul.mubr.msk.bf16.vlgmr.msra.gmra.mxu0 %vm76_vm2, %v2135_v24  ;;  %v1000_v21 = vsel %vm80_vm0, %v889_v60, 0  ;;  %v894_v30 = vunpack.c.l.bf16 %v889_v60 }
 0x171   : > { %v1787_v10 = vpop.f32.mrf.mxu0  ;;  %v1792_v11 = vpop.f32.mrf.mxu1  ;;  %1813 = vmatpush3.bf16.msra.mxu1 %v1000_v21  ;;  %1820 = vmatprep.mubr.msk.bf16.mxu0 %vm2041_vm1, %v2040_v13 }
 0x172   : > { %v890_v12 = vpack.c.bf16 %v885_v9, %v885_v9  ;;  %1824 = vmatprep.subr.bf16.mxu1 %v2040_v13  ;;  %v899_v32 = vsub.f32 %v2240_v55, %v894_v30 }
 0x173   : > { %v836_v14 = vpop.f32.mrf.mxu1  ;;  %v876_v15 = vpop.f32.mrf.mxu0 }
 0x174   : > { %v886_v16 = vadd.f32 %v876_v15, %v662_v57  ;;  %1815 = vmatmul.mubr.msk.bf16.vlgmr.msra.gmra.mxu1 %vm76_vm2, %v2129_v22  ;;  %v1045_v24 = vsel %vm80_vm0, %v890_v12, 0  ;;  %v892_v22 = vunpack.c.l.bf16 %v2229_v43  ;;  %v895_v33 = vunpack.c.l.bf16 %v890_v12 }
 0x175   : > { %v1793_v17 = vpop.f32.mrf.mxu1  ;;  %v1798_v18 = vpop.f32.mrf.mxu0  ;;  %1819 = vmatpush3.bf16.msra.mxu0 %v1045_v24  ;;  %1826 = vmatprep.mubr.msk.bf16.mxu1 %vm2041_vm1, %v2040_v13  ;;  %v904_v35 = vpack.c.bf16 %v899_v32, %v899_v32 }
 0x176   : > { %v891_v20 = vpack.c.bf16 %v886_v16, %v886_v16  ;;  %1830 = vmatprep.subr.bf16.mxu0 %v2040_v13  ;;  %v900_v36 = vsub.f32 %v885_v9, %v895_v33 }
 0x177   : > { %v879_v61 = vpop.f32.mrf.mxu0  ;;  %v1429_v41 = vsel %vm80_vm0, %v904_v35, 0 }
 0x178   : > { %1821 = vmatmul.mubr.msk.bf16.vlgmr.msra.gmra.mxu0 %vm76_vm2, %v2138_v25  ;;  %v1090_v23 = vsel %vm80_vm0, %v891_v20, 0  ;;  %v897_v25 = vsub.f32 %v2225_v39, %v892_v22  ;;  %v896_v37 = vunpack.c.l.bf16 %v891_v20  ;;  %v905_v39 = vpack.c.bf16 %v900_v36, %v900_v36 }
 0x179   : > { %v1799_v26 = vpop.f32.mrf.mxu0  ;;  %1825 = vmatpush3.bf16.msra.mxu1 %v1090_v23  ;;  %1831 = vmatpush3.bf16.msra.mxu0 %v910_v48 }
 0x17a   : > { %1836 = vmatprep.subr.bf16.mxu1 %v2040_v13  ;;  %1832 = vmatprep.mubr.msk.bf16.mxu0 %vm2041_vm1, %v2040_v13  ;;  %v902_v28 = vpack.c.bf16 %v897_v25, %v897_v25  ;;  %v901_v40 = vsub.f32 %v886_v16, %v896_v37  ;;  %v1472_v43 = vsel %vm80_vm0, %v905_v39, 0  ;;  %v1563_v37 = vmul.f32 1.5, %v2027_v1 }
 0x17b   : > { %1842 = vmatprep.subr.bf16.mxu0 %v2040_v13  ;;  %v1565_v1 = vmul.f32 1.5, %v2019_v3 }
 0x17c   : > { %1827 = vmatmul.mubr.msk.bf16.vlgmr.msra.gmra.mxu1 %vm76_vm2, %v2143_v27  ;;  %v893_v27 = vunpack.c.l.bf16 %v2237_v52  ;;  %v1343_v34 = vsel %vm80_vm0, %v902_v28, 0  ;;  %v906_v42 = vpack.c.bf16 %v901_v40, %v901_v40  ;;  %v1562_v28 = vmul.f32 1.5, %v2031_v0 }
 0x17d   : > { %1837 = vmatpush3.bf16.msra.mxu1 %v955_v56  ;;  %1838 = vmatprep.mubr.msk.bf16.mxu1 %vm2041_vm1, %v2040_v13  ;;  %v1564_v0 = vmul.f32 1.5, %v2023_v2  ;;  %v1566_v2 = vmul.f32 1.5, %v2015_v4 }
 0x17e   : > { %1848 = vmatprep.subr.bf16.mxu1 %v2040_v13  ;;  %v898_v29 = vsub.f32 %v2231_v47, %v893_v27 }
 0x180   : > { %1833 = vmatmul.mubr.msk.bf16.vlgmr.msra.gmra.mxu0 %vm76_vm2, %v2091_v5  ;;  %v903_v31 = vpack.c.bf16 %v898_v29, %v898_v29 }
 0x181   : > { %1843 = vmatpush3.bf16.msra.mxu0 %v1000_v21  ;;  %1844 = vmatprep.mubr.msk.bf16.mxu0 %vm2041_vm1, %v2040_v13 }
 0x182   : > { %1854 = vmatprep.subr.bf16.mxu0 %v2040_v13  ;;  %v1386_v38 = vsel %vm80_vm0, %v903_v31, 0 }
 0x184   : > { %1839 = vmatmul.mubr.msk.bf16.vlgmr.msra.gmra.mxu1 %vm76_vm2, %v2095_v6 }
 0x185   : > { %1849 = vmatpush3.bf16.msra.mxu1 %v1045_v24  ;;  %1850 = vmatprep.mubr.msk.bf16.mxu1 %vm2041_vm1, %v2040_v13 }
 0x186   : > { %1860 = vmatprep.subr.bf16.mxu1 %v2040_v13 }
 0x188   : > { %1845 = vmatmul.mubr.msk.bf16.vlgmr.msra.gmra.mxu0 %vm76_vm2, %v2099_v7 }
 0x189   : > { %1855 = vmatpush3.bf16.msra.mxu0 %v1090_v23  ;;  %1856 = vmatprep.mubr.msk.bf16.mxu0 %vm2041_vm1, %v2040_v13 }
 0x18a   : > { %1866 = vmatprep.subr.bf16.mxu0 %v2040_v13 }
 0x18c   : > { %1851 = vmatmul.mubr.msk.bf16.vlgmr.msra.gmra.mxu1 %vm76_vm2, %v2103_v8 }
 0x18d   : > { %1861 = vmatpush3.bf16.msra.mxu1 %v1343_v34  ;;  %1862 = vmatprep.mubr.msk.bf16.mxu1 %vm2041_vm1, %v2040_v13 }
 0x18e   : > { %1872 = vmatprep.subr.bf16.mxu1 %v2040_v13 }
 0x190   : > { %1857 = vmatmul.mubr.msk.bf16.vlgmr.msra.gmra.mxu0 %vm76_vm2, %v2119_v19 }
 0x191   : > { %1867 = vmatpush3.bf16.msra.mxu0 %v1386_v38  ;;  %1868 = vmatprep.mubr.msk.bf16.mxu0 %vm2041_vm1, %v2040_v13 }
 0x192   : > { %1878 = vmatprep.subr.bf16.mxu0 %v2040_v13 }
 0x194   : > { %1863 = vmatmul.mubr.msk.bf16.vlgmr.msra.gmra.mxu1 %vm76_vm2, %v2091_v5  ;;  %v1515_v5 = vsel %vm80_vm0, %v906_v42, 0 }
 0x195   : > { %1873 = vmatpush3.bf16.msra.mxu1 %v1429_v41  ;;  %1874 = vmatprep.mubr.msk.bf16.mxu1 %vm2041_vm1, %v2040_v13 }
 0x196   : > { %1884 = vmatprep.subr.bf16.mxu1 %v2040_v13 }
 0x198   : > { %1869 = vmatmul.mubr.msk.bf16.vlgmr.msra.gmra.mxu0 %vm76_vm2, %v2095_v6 }
 0x199   : > { %1879 = vmatpush3.bf16.msra.mxu0 %v1472_v43  ;;  %1880 = vmatprep.mubr.msk.bf16.mxu0 %vm2041_vm1, %v2040_v13 }
 0x19c   : > { %1875 = vmatmul.mubr.msk.bf16.vlgmr.msra.gmra.mxu1 %vm76_vm2, %v2099_v7 }
 0x19d   : > { %1885 = vmatpush3.bf16.msra.mxu1 %v1515_v5  ;;  %1886 = vmatprep.mubr.msk.bf16.mxu1 %vm2041_vm1, %v2040_v13 }
 0x1a0   : > { %1881 = vmatmul.mubr.msk.bf16.vlgmr.msra.gmra.mxu0 %vm76_vm2, %v2103_v8 }
 0x1a4   : > { %1887 = vmatmul.mubr.msk.bf16.vlgmr.msra.gmra.mxu1 %vm76_vm2, %v2119_v19 }
 0x22c   : > { %v946_v6 = vpop.f32.mrf.mxu1 }
 0x22e   : > { %v1804_v44 = vpop.f32.mrf.mxu1 }
 0x230   : > { %v949_v45 = vpop.f32.mrf.mxu1  ;;  %v991_v47 = vpop.f32.mrf.mxu0 }
 0x232   : > { %v1805_v48 = vpop.f32.mrf.mxu1  ;;  %v1810_v50 = vpop.f32.mrf.mxu0 }
 0x234   : > { %v994_v46 = vpop.f32.mrf.mxu0  ;;  %v1036_v7 = vpop.f32.mrf.mxu1 }
 0x236   : > { %v1811_v51 = vpop.f32.mrf.mxu0  ;;  %v1816_v52 = vpop.f32.mrf.mxu1 }
 0x238   : > { %v1039_v49 = vpop.f32.mrf.mxu1  ;;  %v1081_v54 = vpop.f32.mrf.mxu0 }
 0x23a   : > { %v1817_v55 = vpop.f32.mrf.mxu1  ;;  %v1822_v13 = vpop.f32.mrf.mxu0 }
 0x23c   : > { %v1084_v56 = vpop.f32.mrf.mxu0  ;;  %v1126_v58 = vpop.f32.mrf.mxu1 }
 0x23e   : > { %v1823_v8 = vpop.f32.mrf.mxu0  ;;  %v1828_v59 = vpop.f32.mrf.mxu1 }
 0x240   : > { %v1129_v53 = vpop.f32.mrf.mxu1  ;;  %v1168_v19 = vpop.f32.mrf.mxu0 }
 0x241   : > { %v1169_v26 = vadd.f32 %v1168_v19, %v946_v6 }
 0x242   : > { %v1829_v60 = vpop.f32.mrf.mxu1  ;;  %v1834_v62 = vpop.f32.mrf.mxu0 }
 0x244   : > { %v1171_v63 = vpop.f32.mrf.mxu0  ;;  %v1210_v9 = vpop.f32.mrf.mxu1 }
 0x245   : > { %v1211_v31 = vadd.f32 %v1210_v9, %v991_v47 }
 0x246   : > { %v1835_v21 = vpop.f32.mrf.mxu0  ;;  %v1840_v10 = vpop.f32.mrf.mxu1 }
 0x248   : > { %v1213_v11 = vpop.f32.mrf.mxu1  ;;  %v1252_v57 = vpop.f32.mrf.mxu0 }
 0x249   : > { %v1253_v40 = vadd.f32 %v1252_v57, %v1036_v7 }
 0x24a   : > { %v1841_v12 = vpop.f32.mrf.mxu1  ;;  %v1846_v14 = vpop.f32.mrf.mxu0 }
 0x24c   : > { %v1255_v15 = vpop.f32.mrf.mxu0  ;;  %v1294_v16 = vpop.f32.mrf.mxu1 }
 0x24d   : > { %v1295_v47 = vadd.f32 %v1294_v16, %v1081_v54 }
 0x24e   : > { %v1847_v24 = vpop.f32.mrf.mxu0  ;;  %v1852_v17 = vpop.f32.mrf.mxu1 }
 0x250   : > { %v1297_v18 = vpop.f32.mrf.mxu1  ;;  %v1336_v20 = vpop.f32.mrf.mxu0 }
 0x251   : > { %v1337_v7 = vadd.f32 %v1336_v20, %v1126_v58 }
 0x252   : > { %v1853_v61 = vpop.f32.mrf.mxu1  ;;  %v1858_v23 = vpop.f32.mrf.mxu0 }
 0x254   : > { %v1339_v22 = vpop.f32.mrf.mxu0  ;;  %v1379_v25 = vpop.f32.mrf.mxu1 }
 0x255   : > { %v1557_v27 = vadd.f32 %v1379_v25, %v1169_v26 }
 0x256   : > { %v1859_v29 = vpop.f32.mrf.mxu0  ;;  %v1864_v30 = vpop.f32.mrf.mxu1 }
 0x257   : > { %v1567_v32 = vmul.f32 0.5, %v1557_v27 }
 0x258   : > { %v1382_v33 = vpop.f32.mrf.mxu1  ;;  %v1422_v34 = vpop.f32.mrf.mxu0 }
 0x259   : > { %v1572_v35 = vsub.f32 %v1562_v28, %v1567_v32   ;;  %v1558_v36 = vadd.f32 %v1422_v34, %v1211_v31 }
 0x25a   : > { %v1865_v38 = vpop.f32.mrf.mxu1  ;;  %v1870_v39 = vpop.f32.mrf.mxu0 }
 0x25b   : > { %v1568_v41 = vmul.f32 0.5, %v1558_v36  ;;  %1578 = vst.msk [vmem:[#allocation5] sm:$0xff] (%p31_p5), %vm76_vm2, %v1572_v35 }
 0x25c   : > { %v1425_v42 = vpop.f32.mrf.mxu0  ;;  %v1465_v43 = vpop.f32.mrf.mxu1 }
 0x25d   : > { %v1573_v5 = vsub.f32 %v1563_v37, %v1568_v41   ;;  %v1559_v6 = vadd.f32 %v1465_v43, %v1253_v40 }
 0x25e   : > { %v1871_v44 = vpop.f32.mrf.mxu0  ;;  %v1876_v45 = vpop.f32.mrf.mxu1 }
 0x25f   : > { %v1569_v48 = vmul.f32 0.5, %v1559_v6  ;;  %1579 = vst.msk [vmem:[#allocation5 + $0x8] sm:$0xff] (%p31_p5), %vm76_vm2, %v1573_v5 }
 0x260   : > { %v1468_v50 = vpop.f32.mrf.mxu1  ;;  %v1508_v46 = vpop.f32.mrf.mxu0 }
 0x261   : > { %v1574_v51 = vsub.f32 %v1564_v0, %v1569_v48   ;;  %v1560_v52 = vadd.f32 %v1508_v46, %v1295_v47  ;;  %v2362_v0 = vmov %v1572_v35 }
 0x262   : > { %v1877_v49 = vpop.f32.mrf.mxu1  ;;  %v1882_v55 = vpop.f32.mrf.mxu0 }
 0x263   : > { %v1570_v13 = vmul.f32 0.5, %v1560_v52  ;;  %1580 = vst.msk [vmem:[#allocation5 + $0x10] sm:$0xff] (%p31_p5), %vm76_vm2, %v1574_v51 }
 0x264   : > { %v1551_v56 = vpop.f32.mrf.mxu1  ;;  %v1511_v8 = vpop.f32.mrf.mxu0 }
 0x265   : > { %v1575_v59 = vsub.f32 %v1565_v1, %v1570_v13   ;;  %v1561_v53 = vadd.f32 %v1551_v56, %v1337_v7  ;;  %v2361_v1 = vmov %v1573_v5 }
 0x266   : > { %v1888_v19 = vpop.f32.mrf.mxu1  ;;  %v1883_v60 = vpop.f32.mrf.mxu0 }
 0x267   : > { %v1571_v54 = vmul.f32 0.5, %v1561_v53  ;;  %v2359_v3 = vmov %v1575_v59  ;;  %33 = sbr.rel (!%p31_p5) target bundleno = 16 (0x10), region = 35  ;;  %1581 = vst.msk [vmem:[#allocation5 + $0x18] sm:$0xff] (%p31_p5), %vm76_vm2, %v1575_v59 }
 0x268   : > { %v1554_v62 = vpop.f32.mrf.mxu1 }
 0x269   : > { %v1576_v63 = vsub.f32 %v1566_v2, %v1571_v54   ;;  %v2360_v2 = vmov %v1574_v51 }
 0x26a   : > { %v1889_v9 = vpop.f32.mrf.mxu1 }
 0x26b   : > { %v2358_v4 = vmov %v1576_v63  ;;  %1582 = vst.msk [vmem:[#allocation5 + $0x20] sm:$0xff] (%p31_p5), %vm76_vm2, %v1576_v63 }
 0x26c   :  { %1976 = shalt.err (!%p1973_p10)
}
 0x26d   :  { %1594 = dma.vmem_to_hbm [thread:$0]  %s1589_s14, 640, %s2357_s1, [#allocation4], %s2038_s9, %s2038_s9, %s2039_s10  }
 0x26e   :  { %2011 = dma.done.wait [#allocation4], 640  }
 0x26f   :  { %2012 = vsyncadd [#allocation4], 4294966656 }
 0x270   :  { %1598 = vsyncpa [#allocation3], 1 }
 0x271   :  { %1599 = vsyncpa [#allocation4], 1 }

</bundles_post_ra>
